<compile_context>
chip_gen: v6e
topology: v6e:2x2x1
jax: 0.10.0
libtpu: 0.0.40
codegen_flags: <defaults>
</compile_context>

<pallas_src>
from functools import partial

import numpy as np
import jax
import jax.numpy as jnp
from jax.experimental import pallas as pl
from jax.experimental.pallas import tpu as pltpu

ACT = jnp.bfloat16          # activation storage dtype (halves HBM traffic)


# ----------------------------------------------------------------------------
# Pallas kernels
# ----------------------------------------------------------------------------

def _mm_kernel(a_ref, b_ref, bias_ref, o_ref, *, relu):
    acc = jnp.dot(a_ref[...], b_ref[...], preferred_element_type=jnp.float32)
    acc = acc + bias_ref[...]
    if relu:
        acc = jnp.maximum(acc, 0.0)
    o_ref[...] = acc.astype(o_ref.dtype)


def pallas_matmul(a, b, bias=None, relu=False, out_dtype=ACT):
    """(M, K) @ (K, N) + bias, optional fused ReLU.  bf16 MXU, f32 accumulate."""
    M, K = a.shape
    N = b.shape[1]
    if bias is None:
        bias = jnp.zeros((N,), jnp.float32)
    bias = bias.reshape(1, N).astype(jnp.float32)
    a = a.astype(jnp.bfloat16)
    b = b.astype(jnp.bfloat16)
    TM = M if M <= 256 else 256
    return pl.pallas_call(
        partial(_mm_kernel, relu=relu),
        out_shape=jax.ShapeDtypeStruct((M, N), out_dtype),
        grid=(pl.cdiv(M, TM),),
        in_specs=[
            pl.BlockSpec((TM, K), lambda i: (i, 0)),
            pl.BlockSpec((K, N), lambda i: (0, 0)),
            pl.BlockSpec((1, N), lambda i: (0, 0)),
        ],
        out_specs=pl.BlockSpec((TM, N), lambda i: (i, 0)),
        compiler_params=pltpu.CompilerParams(dimension_semantics=("parallel",)),
    )(a, b, bias)


def _mlp_kernel(x_ref, w1_ref, b1_ref, w2_ref, b2_ref, o_ref):
    h = jnp.dot(x_ref[...], w1_ref[...], preferred_element_type=jnp.float32)
    h = jnp.maximum(h + b1_ref[...], 0.0).astype(jnp.bfloat16)
    acc = jnp.dot(h, w2_ref[...], preferred_element_type=jnp.float32) + b2_ref[...]
    o_ref[...] = acc.astype(o_ref.dtype)


def mlp_fwd(x, p):
    """Fused fc1 + ReLU + fc2 (1x1 convs) over an NHWC feature map."""
    B, H, W, C = x.shape
    hidden = p['fc1_w'].shape[0]
    Cout = p['fc2_w'].shape[0]
    xr = x.reshape(-1, C).astype(jnp.bfloat16)
    M = xr.shape[0]
    w1 = p['fc1_w'].reshape(hidden, C).T.astype(jnp.bfloat16)
    w2 = p['fc2_w'].reshape(Cout, hidden).T.astype(jnp.bfloat16)
    b1 = p['fc1_b'].reshape(1, hidden).astype(jnp.float32)
    b2 = p['fc2_b'].reshape(1, Cout).astype(jnp.float32)
    TM = M if M <= 256 else 256
    out = pl.pallas_call(
        _mlp_kernel,
        out_shape=jax.ShapeDtypeStruct((M, Cout), ACT),
        grid=(pl.cdiv(M, TM),),
        in_specs=[
            pl.BlockSpec((TM, C), lambda i: (i, 0)),
            pl.BlockSpec((C, hidden), lambda i: (0, 0)),
            pl.BlockSpec((1, hidden), lambda i: (0, 0)),
            pl.BlockSpec((hidden, Cout), lambda i: (0, 0)),
            pl.BlockSpec((1, Cout), lambda i: (0, 0)),
        ],
        out_specs=pl.BlockSpec((TM, Cout), lambda i: (i, 0)),
        compiler_params=pltpu.CompilerParams(dimension_semantics=("parallel",)),
    )(xr, w1, b1, w2, b2)
    return out.reshape(B, H, W, Cout)


def _wattn_kernel(q_ref, k_ref, v_ref, bias_ref, o_ref, *, scale):
    q = q_ref[0]                                        # (Gb, N, dh) bf16
    k = k_ref[0]
    v = v_ref[0]
    b = bias_ref[0]                                     # (N, N) f32
    s = jnp.einsum('gnd,gmd->gnm', q, k, preferred_element_type=jnp.float32)
    s = s * scale + b[None]
    m = jnp.max(s, axis=-1, keepdims=True)
    e = jnp.exp(s - m)
    l = jnp.sum(e, axis=-1, keepdims=True)
    p = e * pl.reciprocal(l, approx=True)
    o = jnp.einsum('gnm,gmd->gnd', p.astype(v.dtype), v,
                   preferred_element_type=jnp.float32)
    o_ref[0] = o.astype(o_ref.dtype)


def fused_window_attention(q, k, v, bias, scale, gb=64):
    """q,k,v: (heads, G, N, dh); bias: (heads, N, N).  Returns (heads, G, N, dh)."""
    h, G, N, dh = q.shape
    Gb = min(gb, G)
    Gp = pl.cdiv(G, Gb) * Gb
    if Gp != G:
        pad = ((0, 0), (0, Gp - G), (0, 0), (0, 0))
        q, k, v = jnp.pad(q, pad), jnp.pad(k, pad), jnp.pad(v, pad)
    q = q.astype(jnp.bfloat16)
    k = k.astype(jnp.bfloat16)
    v = v.astype(jnp.bfloat16)
    bias = bias.astype(jnp.float32)
    out = pl.pallas_call(
        partial(_wattn_kernel, scale=scale),
        out_shape=jax.ShapeDtypeStruct((h, Gp, N, dh), ACT),
        grid=(h, Gp // Gb),
        in_specs=[
            pl.BlockSpec((1, Gb, N, dh), lambda a, g: (a, g, 0, 0)),
            pl.BlockSpec((1, Gb, N, dh), lambda a, g: (a, g, 0, 0)),
            pl.BlockSpec((1, Gb, N, dh), lambda a, g: (a, g, 0, 0)),
            pl.BlockSpec((1, N, N), lambda a, g: (a, 0, 0)),
        ],
        out_specs=pl.BlockSpec((1, Gb, N, dh), lambda a, g: (a, g, 0, 0)),
        compiler_params=pltpu.CompilerParams(
            dimension_semantics=("parallel", "parallel")),
    )(q, k, v, bias)
    return out[:, :G]


def _xattn_kernel(scale_ref, q_ref, k_ref, v1_ref, v2_ref, o1_ref, o2_ref, *, mode):
    scale = scale_ref[0, 0]
    q = q_ref[...]                                       # (Gb, M, d) bf16
    k = k_ref[...]
    v1 = v1_ref[...]
    v2 = v2_ref[...]
    s = jnp.einsum('gmd,gnd->gmn', q, k, preferred_element_type=jnp.float32) * scale
    m1 = jnp.max(s, axis=-1, keepdims=True)
    e1 = jnp.exp(s - m1)
    p1 = e1 * pl.reciprocal(jnp.sum(e1, axis=-1, keepdims=True), approx=True)
    p1b = p1.astype(v1.dtype)
    o1 = jnp.einsum('gmn,gnd->gmd', p1b, v1, preferred_element_type=jnp.float32)
    o1_ref[...] = o1.astype(o1_ref.dtype)
    if mode == 'same':
        o2 = jnp.einsum('gmn,gnd->gmd', p1b, v2, preferred_element_type=jnp.float32)
    elif mode == 'transpose':
        pt = jnp.swapaxes(p1, -1, -2).astype(v2.dtype)
        o2 = jnp.einsum('gnm,gmd->gnd', pt, v2, preferred_element_type=jnp.float32)
    else:  # 'resoftmax_t': softmax of s^T along its last dim, then @ v2
        st = jnp.swapaxes(s, -1, -2)
        m2 = jnp.max(st, axis=-1, keepdims=True)
        e2 = jnp.exp(st - m2)
        p2 = e2 * pl.reciprocal(jnp.sum(e2, axis=-1, keepdims=True), approx=True)
        o2 = jnp.einsum('gnm,gmd->gnd', p2.astype(v2.dtype), v2,
                        preferred_element_type=jnp.float32)
    o2_ref[...] = o2.astype(o2_ref.dtype)


def fused_cross_attention(q, k, v1, v2, scale, mode, gb=32):
    """MFIB cross attention: s = q@k^T*scale; o1 = softmax(s)@v1;
       o2 depends on mode ('same' | 'transpose' | 'resoftmax_t')."""
    G, M, d = q.shape
    Gb = min(gb, G)
    Gp = pl.cdiv(G, Gb) * Gb
    if Gp != G:
        pad = ((0, Gp - G), (0, 0), (0, 0))
        q, k = jnp.pad(q, pad), jnp.pad(k, pad)
        v1, v2 = jnp.pad(v1, pad), jnp.pad(v2, pad)
    scale_arr = jnp.asarray(scale, jnp.float32).reshape(1, 1)
    q = q.astype(jnp.bfloat16)
    k = k.astype(jnp.bfloat16)
    v1 = v1.astype(jnp.bfloat16)
    v2 = v2.astype(jnp.bfloat16)
    o1, o2 = pl.pallas_call(
        partial(_xattn_kernel, mode=mode),
        out_shape=(jax.ShapeDtypeStruct((Gp, M, d), ACT),
                   jax.ShapeDtypeStruct((Gp, M, d), ACT)),
        grid=(Gp // Gb,),
        in_specs=[
            pl.BlockSpec((1, 1), lambda i: (0, 0)),
            pl.BlockSpec((Gb, M, d), lambda i: (i, 0, 0)),
            pl.BlockSpec((Gb, M, d), lambda i: (i, 0, 0)),
            pl.BlockSpec((Gb, M, d), lambda i: (i, 0, 0)),
            pl.BlockSpec((Gb, M, d), lambda i: (i, 0, 0)),
        ],
        out_specs=(pl.BlockSpec((Gb, M, d), lambda i: (i, 0, 0)),
                   pl.BlockSpec((Gb, M, d), lambda i: (i, 0, 0))),
        compiler_params=pltpu.CompilerParams(dimension_semantics=("parallel",)),
    )(scale_arr, q, k, v1, v2)
    return o1[:G], o2[:G]


def _rln_kernel(x_ref, w_ref, b_ref, m1w_ref, m1b_ref, m2w_ref, m2b_ref,
                y_ref, rs_ref, rb_ref, *, eps):
    x = x_ref[0].astype(jnp.float32)                    # (HW, C)
    mean = jnp.mean(x)
    var = jnp.mean(jnp.square(x - mean))
    std = jnp.sqrt(var + eps)
    inv = 1.0 / std
    y = (x - mean) * inv * w_ref[0] + b_ref[0]
    y_ref[0] = y.astype(y_ref.dtype)
    rs_ref[0] = (std * m1w_ref[...] + m1b_ref[...]).astype(rs_ref.dtype)
    rb_ref[0] = (mean * m2w_ref[...] + m2b_ref[...]).astype(rb_ref.dtype)


def rln_forward(x, p, eps=1e-5):
    """Revised LayerNorm (normalize over C,H,W per sample).  NHWC input."""
    B, H, W, C = x.shape
    HW = H * W
    x2 = x.reshape(B, HW, C)
    w = p['weight'].reshape(1, C).astype(jnp.float32)
    b = p['bias'].reshape(1, C).astype(jnp.float32)
    m1w = p['meta1_w'].reshape(1, C).astype(jnp.float32)
    m1b = p['meta1_b'].reshape(1, C).astype(jnp.float32)
    m2w = p['meta2_w'].reshape(1, C).astype(jnp.float32)
    m2b = p['meta2_b'].reshape(1, C).astype(jnp.float32)
    y, rs, rb = pl.pallas_call(
        partial(_rln_kernel, eps=eps),
        out_shape=(jax.ShapeDtypeStruct((B, HW, C), ACT),
                   jax.ShapeDtypeStruct((B, 1, C), jnp.float32),
                   jax.ShapeDtypeStruct((B, 1, C), jnp.float32)),
        grid=(B,),
        in_specs=[pl.BlockSpec((1, HW, C), lambda i: (i, 0, 0))] +
                 [pl.BlockSpec((1, C), lambda i: (0, 0))] * 6,
        out_specs=(pl.BlockSpec((1, HW, C), lambda i: (i, 0, 0)),
                   pl.BlockSpec((1, 1, C), lambda i: (i, 0, 0)),
                   pl.BlockSpec((1, 1, C), lambda i: (i, 0, 0))),
        compiler_params=pltpu.CompilerParams(dimension_semantics=("parallel",)),
    )(x2, w, b, m1w, m1b, m2w, m2b)
    return (y.reshape(B, H, W, C),
            rs.reshape(B, 1, 1, C),
            rb.reshape(B, 1, 1, C))


def _dwconv_kernel(x_ref, w_ref, b_ref, o_ref, *, kh, kw):
    x = x_ref[0].astype(jnp.float32)                    # (Hp, Wp, C)
    _, Ho, Wo, C = o_ref.shape
    acc = jnp.zeros((Ho, Wo, C), jnp.float32)
    for i in range(kh):
        for j in range(kw):
            acc = acc + x[i:i + Ho, j:j + Wo, :] * w_ref[i * kw + j]
    acc = acc + b_ref[...]
    o_ref[0] = acc.astype(o_ref.dtype)


def dwconv_nhwc(x, w, bias=None, padding=1, pad_mode='constant'):
    """Depthwise conv, NHWC.  x: (B,H,W,C); w: torch layout (C,1,kh,kw)."""
    if isinstance(padding, int):
        padding = (padding, padding)
    B, H, W, C = x.shape
    kh, kw = w.shape[2], w.shape[3]
    ph, pw = padding
    mode = 'reflect' if pad_mode == 'reflect' else 'constant'
    xp = jnp.pad(x.astype(ACT), ((0, 0), (ph, ph), (pw, pw), (0, 0)), mode=mode)
    Hp, Wp = xp.shape[1], xp.shape[2]
    Ho, Wo = Hp - kh + 1, Wp - kw + 1
    wt = w.reshape(C, kh * kw).T.astype(jnp.float32)    # (kh*kw, C)
    bvec = bias if bias is not None else jnp.zeros((C,), jnp.float32)
    bvec = bvec.reshape(1, C).astype(jnp.float32)
    return pl.pallas_call(
        partial(_dwconv_kernel, kh=kh, kw=kw),
        out_shape=jax.ShapeDtypeStruct((B, Ho, Wo, C), ACT),
        grid=(B,),
        in_specs=[
            pl.BlockSpec((1, Hp, Wp, C), lambda i: (i, 0, 0, 0)),
            pl.BlockSpec((kh * kw, C), lambda i: (0, 0)),
            pl.BlockSpec((1, C), lambda i: (0, 0)),
        ],
        out_specs=pl.BlockSpec((1, Ho, Wo, C), lambda i: (i, 0, 0, 0)),
        compiler_params=pltpu.CompilerParams(dimension_semantics=("parallel",)),
    )(xp, wt, bvec)


# ----------------------------------------------------------------------------
# Conv wrappers built on the Pallas matmul (NHWC)
# ----------------------------------------------------------------------------

def pconv(x, w, b=None, relu=False):
    """1x1 conv.  x: (B,H,W,Cin) NHWC; w: torch (Cout,Cin,1,1)."""
    B, H, W, Cin = x.shape
    Cout = w.shape[0]
    out = pallas_matmul(x.reshape(-1, Cin), w.reshape(Cout, Cin).T, bias=b, relu=relu)
    return out.reshape(B, H, W, Cout)


def conv2d(x, w, b=None, stride=1, padding=0, pad_mode='constant'):
    """General conv via im2col + Pallas matmul.  x NHWC; w torch (Cout,Cin,kh,kw)."""
    B, H, W, Cin = x.shape
    Cout, _, kh, kw = w.shape
    if padding > 0:
        mode = 'reflect' if pad_mode == 'reflect' else 'constant'
        x = jnp.pad(x, ((0, 0), (padding, padding), (padding, padding), (0, 0)), mode=mode)
    Hp, Wp = x.shape[1], x.shape[2]
    Ho = (Hp - kh) // stride + 1
    Wo = (Wp - kw) // stride + 1
    cols = []
    for i in range(kh):
        for j in range(kw):
            cols.append(x[:, i:i + stride * Ho:stride, j:j + stride * Wo:stride, :])
    col = jnp.stack(cols, axis=3).reshape(B * Ho * Wo, kh * kw * Cin)
    wmat = w.transpose(2, 3, 1, 0).reshape(kh * kw * Cin, Cout)
    out = pallas_matmul(col, wmat, bias=b)
    return out.reshape(B, Ho, Wo, Cout)


# ----------------------------------------------------------------------------
# Plain-JAX glue helpers
# ----------------------------------------------------------------------------

def bilinear_ac(img, Ho, Wo):
    """F.interpolate(mode='bilinear', align_corners=True) over last two dims."""
    H, W = img.shape[-2], img.shape[-1]

    def src(n_in, n_out):
        if n_out == 1 or n_in == 1:
            return jnp.zeros((n_out,), jnp.float32)
        return jnp.arange(n_out, dtype=jnp.float32) * ((n_in - 1) / (n_out - 1))

    ys, xs = src(H, Ho), src(W, Wo)
    y0 = jnp.clip(jnp.floor(ys).astype(jnp.int32), 0, H - 1)
    x0 = jnp.clip(jnp.floor(xs).astype(jnp.int32), 0, W - 1)
    y1 = jnp.clip(y0 + 1, 0, H - 1)
    x1 = jnp.clip(x0 + 1, 0, W - 1)
    wy = (ys - y0.astype(jnp.float32)).reshape(-1, 1)
    wx = (xs - x0.astype(jnp.float32)).reshape(1, -1)
    r0 = jnp.take(img, y0, axis=-2)
    r1 = jnp.take(img, y1, axis=-2)
    a = jnp.take(r0, x0, axis=-1)
    b = jnp.take(r0, x1, axis=-1)
    c = jnp.take(r1, x0, axis=-1)
    d = jnp.take(r1, x1, axis=-1)
    return a * (1 - wy) * (1 - wx) + b * (1 - wy) * wx + c * wy * (1 - wx) + d * wy * wx


def pixel_shuffle(x, r):
    """NHWC pixel shuffle."""
    if r == 1:
        return x
    B, H, W, C = x.shape
    Co = C // (r * r)
    x = x.reshape(B, H, W, Co, r, r)
    x = x.transpose(0, 1, 4, 2, 5, 3)
    return x.reshape(B, H * r, W * r, Co)


def window_partition(x, ws):
    B, H, W, C = x.shape
    x = x.reshape(B, H // ws, ws, W // ws, ws, C)
    return x.transpose(0, 1, 3, 2, 4, 5).reshape(-1, ws * ws, C)


def window_reverse(windows, ws, H, W):
    B = windows.shape[0] // ((H // ws) * (W // ws))
    x = windows.reshape(B, H // ws, W // ws, ws, ws, -1)
    return x.transpose(0, 1, 3, 2, 4, 5).reshape(B, H, W, -1)


_REL_POS_CACHE = {}


def get_relative_positions(ws):
    if ws not in _REL_POS_CACHE:
        coords = np.stack(np.meshgrid(np.arange(ws), np.arange(ws), indexing='ij'),
                          axis=0).reshape(2, -1)
        rel = (coords[:, :, None] - coords[:, None, :]).transpose(1, 2, 0).astype(np.float32)
        rel = np.sign(rel) * np.log1p(np.abs(rel))
        _REL_POS_CACHE[ws] = jnp.asarray(rel)
    return _REL_POS_CACHE[ws]


# ----------------------------------------------------------------------------
# Modules (forward passes, NHWC)
# ----------------------------------------------------------------------------

def window_attention_fwd(qkv, p, dim, heads, ws):
    B_, N, _ = qkv.shape
    dh = dim // heads
    qkv = qkv.reshape(B_, N, 3, heads, dh).transpose(2, 3, 0, 1, 4)   # (3, heads, B_, N, dh)
    q, k, v = qkv[0], qkv[1], qkv[2]
    # relative position bias (meta MLP), computed once per block per forward
    rel = get_relative_positions(ws).reshape(N * N, 2)
    h1 = pallas_matmul(rel, p['meta_w1'].T, bias=p['meta_b1'], relu=True,
                       out_dtype=jnp.float32)
    bias = pallas_matmul(h1, p['meta_w2'].T, bias=p['meta_b2'], out_dtype=jnp.float32)
    bias = bias.reshape(N, N, heads).transpose(2, 0, 1)               # (heads, N, N)
    out = fused_window_attention(q, k, v, bias, dh ** -0.5)           # (heads, B_, N, dh)
    return out.transpose(1, 2, 0, 3).reshape(B_, N, dim)


def attention_fwd(x, p, dim, heads, ws, shift, use_attn):
    B, H, W, C = x.shape
    V = pconv(x, p['V_w'], p['V_b'])
    if use_attn:
        QK = pconv(x, p['QK_w'], p['QK_b'])
        QKV = jnp.concatenate([QK, V], axis=-1)
        mod_pad_h = (ws - H % ws) % ws
        mod_pad_w = (ws - W % ws) % ws
        if shift > 0:
            pads = ((0, 0),
                    (shift, (ws - shift + mod_pad_h) % ws),
                    (shift, (ws - shift + mod_pad_w) % ws),
                    (0, 0))
        else:
            pads = ((0, 0), (0, mod_pad_h), (0, mod_pad_w), (0, 0))
        shifted = jnp.pad(QKV, pads, mode='reflect')
        Ht, Wt = shifted.shape[1], shifted.shape[2]
        qkv = window_partition(shifted, ws)
        attn_windows = window_attention_fwd(qkv, p['wattn'], dim, heads, ws)
        attn_out = window_reverse(attn_windows, ws, Ht, Wt)[:, shift:shift + H,
                                                            shift:shift + W, :]
        conv_out = dwconv_nhwc(V, p['conv_w'], p['conv_b'], padding=2, pad_mode='reflect')
        return pconv(conv_out + attn_out, p['proj_w'], p['proj_b'])
    else:
        conv_out = dwconv_nhwc(V, p['conv_w'], p['conv_b'], padding=2, pad_mode='reflect')
        return pconv(conv_out, p['proj_w'], p['proj_b'])


def block_fwd(x, p, dim, heads, ws):
    identity = x
    if p['use_attn']:
        x, rescale, rebias = rln_forward(x, p['norm1'])
    x = attention_fwd(x, p['attn'], dim, heads, ws, p['shift'], p['use_attn'])
    if p['use_attn']:
        x = x * rescale + rebias
    x = (identity + x).astype(ACT)
    identity = x
    x = mlp_fwd(x, p['mlp'])
    return (identity + x).astype(ACT)


def basic_layer_fwd(x, lp):
    for bp in lp['blocks']:
        x = block_fwd(x, bp, lp['dim'], lp['heads'], lp['ws'])
    return x


def mfib_fwd(x_u, x_d, p):
    B, H, W, C = x_u.shape
    c = C // 3
    x_d_norm, rescale_d, bias_d = rln_forward(x_d, p['norm_d'])
    x_u_norm, rescale_u, bias_u = rln_forward(x_u, p['norm_u'])
    qv_u = pconv(x_u_norm, p['qkv_u_w'], p['qkv_u_b'])
    q_u, v_u = qv_u[..., :C], qv_u[..., C:]
    kv_d = pconv(x_d_norm, p['qkv_d_w'], p['qkv_d_b'])
    k_d, v_d = kv_d[..., :C], kv_d[..., C:]

    q_u_h, q_u_w, q_u_c = q_u[..., :c], q_u[..., c:2 * c], q_u[..., 2 * c:]
    k_d_h, k_d_w, k_d_c = k_d[..., :c], k_d[..., c:2 * c], k_d[..., 2 * c:]
    v_u_h, v_u_w, v_u_c = v_u[..., :c], v_u[..., c:2 * c], v_u[..., 2 * c:]
    v_d_h, v_d_w, v_d_c = v_d[..., :c], v_d[..., c:2 * c], v_d[..., 2 * c:]

    # H-axis attention: one fused kernel (softmax reused for both directions)
    def to_h(t):
        return t.transpose(0, 2, 1, 3).reshape(B * W, H, c)

    def from_h(t):
        return t.reshape(B, W, H, c).transpose(0, 2, 1, 3)

    o1, o2 = fused_cross_attention(to_h(q_u_h), to_h(k_d_h), to_h(v_d_h), to_h(v_u_h),
                                   p['scale_h'], mode='transpose')
    x_d2u_h, x_u2d_h = from_h(o1), from_h(o2)

    # W-axis attention: softmax over rows and over columns computed in one kernel
    def to_w(t):
        return t.reshape(B * H, W, c)

    o1, o2 = fused_cross_attention(to_w(q_u_w), to_w(k_d_w), to_w(v_d_w), to_w(v_u_w),
                                   p['scale_w'], mode='resoftmax_t')
    x_d2u_w, x_u2d_w = o1.reshape(B, H, W, c), o2.reshape(B, H, W, c)

    # C-axis attention: single softmax shared by both outputs
    def to_c(t):
        return t.transpose(0, 3, 1, 2).reshape(B, c, H * W)

    def from_c(t):
        return t.reshape(B, c, H, W).transpose(0, 2, 3, 1)

    o1, o2 = fused_cross_attention(to_c(q_u_c), to_c(k_d_c), to_c(v_d_c), to_c(v_u_c),
                                   p['scale_c'], mode='same')
    x_d2u_c, x_u2d_c = from_c(o1), from_c(o2)

    x_d2u = jnp.concatenate([x_d2u_h, x_d2u_w, x_d2u_c], axis=-1)
    x_u2d = jnp.concatenate([x_u2d_h, x_u2d_w, x_u2d_c], axis=-1)
    x_u_new = x_d2u * rescale_u + bias_u + x_u
    x_d_new = x_u2d * rescale_d + bias_d + x_d
    return (x_u_new + x_d_new).astype(ACT)


def mplb_fwd(x, p):
    input_ = x
    B, H, W, C = x.shape
    pd = C // 3
    x1, x2, x3 = x[..., :pd], x[..., pd:2 * pd], x[..., 2 * pd:]

    # hw prompt: bilinear resize -> 3x3 dwconv -> multiply
    hw_i = bilinear_ac(p['hw'], H, W)                             # (1, pd, H, W) NCHW
    f1 = dwconv_nhwc(hw_i.transpose(0, 2, 3, 1), p['conv_hw_w'], None,
                     padding=1, pad_mode='constant')              # (1, H, W, pd)
    x1 = x1 * f1

    # ch prompt: (pd, H) profile, depthwise 1-D conv along H
    ch_i = bilinear_ac(p['ch'], pd, H)[0, 0]                      # (pd, H)
    m2 = dwconv_nhwc(ch_i.T.reshape(1, 1, H, pd),
                     p['conv_ch_w'].reshape(pd, 1, 1, 3), None,
                     padding=(0, 1), pad_mode='constant')         # (1, 1, H, pd)
    x2 = x2 * m2.reshape(H, pd)[None, :, None, :]

    # cw prompt: (pd, W) profile, depthwise 1-D conv along W
    cw_i = bilinear_ac(p['cw'], pd, W)[0, 0]                      # (pd, W)
    m3 = dwconv_nhwc(cw_i.T.reshape(1, 1, W, pd),
                     p['conv_cw_w'].reshape(pd, 1, 1, 3), None,
                     padding=(0, 1), pad_mode='constant')         # (1, 1, W, pd)
    x3 = x3 * m3.reshape(W, pd)[None, None, :, :]

    x = jnp.concatenate([x1, x2, x3], axis=-1).astype(ACT)
    return (pconv(x, p['conv4_w'], p['conv4_b']) + input_).astype(ACT)


def patch_embed_fwd(x, p):
    k = p['w'].shape[-1]
    if k == 1 and p['stride'] == 1:
        return pconv(x, p['w'], p['b'])
    return conv2d(x, p['w'], p['b'], stride=p['stride'], padding=p['padding'],
                  pad_mode='reflect')


def patch_unembed_fwd(x, p):
    k = p['w'].shape[-1]
    if k == 1:
        y = pconv(x, p['w'], p['b'])
    else:
        y = conv2d(x, p['w'], p['b'], stride=1, padding=k // 2, pad_mode='reflect')
    return pixel_shuffle(y, p['patch'])


# ----------------------------------------------------------------------------
# Parameter initialization (deterministic)
# ----------------------------------------------------------------------------

class ParamGen:
    def __init__(self, key):
        self.key = key
        self.count = 0

    def _next(self):
        self.count += 1
        return jax.random.fold_in(self.key, self.count)

    def normal(self, shape, scale=0.02):
        return scale * jax.random.normal(self._next(), shape, dtype=jnp.float32)

    def zeros(self, shape):
        return jnp.zeros(shape, jnp.float32)

    def ones(self, shape):
        return jnp.ones(shape, jnp.float32)


def init_rln(pg, dim):
    return {'weight': pg.ones((1, dim, 1, 1)), 'bias': pg.zeros((1, dim, 1, 1)),
            'meta1_w': pg.normal((dim, 1, 1, 1)), 'meta1_b': pg.zeros((dim,)),
            'meta2_w': pg.normal((dim, 1, 1, 1)), 'meta2_b': pg.zeros((dim,))}


def init_attention(pg, dim, heads, use_attn):
    p = {'conv_w': pg.normal((dim, 1, 5, 5)), 'conv_b': pg.zeros((dim,)),
         'V_w': pg.normal((dim, dim, 1, 1)), 'V_b': pg.zeros((dim,)),
         'proj_w': pg.normal((dim, dim, 1, 1)), 'proj_b': pg.zeros((dim,))}
    if use_attn:
        p['QK_w'] = pg.normal((2 * dim, dim, 1, 1))
        p['QK_b'] = pg.zeros((2 * dim,))
        p['wattn'] = {'meta_w1': pg.normal((256, 2)), 'meta_b1': pg.zeros((256,)),
                      'meta_w2': pg.normal((heads, 256)), 'meta_b2': pg.zeros((heads,))}
    return p


def init_block(pg, dim, heads, mlp_ratio, use_attn, shift):
    p = {'use_attn': bool(use_attn), 'shift': int(shift)}
    if use_attn:
        p['norm1'] = init_rln(pg, dim)
    p['attn'] = init_attention(pg, dim, heads, use_attn)
    hidden = int(dim * mlp_ratio)
    p['mlp'] = {'fc1_w': pg.normal((hidden, dim, 1, 1)), 'fc1_b': pg.zeros((hidden,)),
                'fc2_w': pg.normal((dim, hidden, 1, 1)), 'fc2_b': pg.zeros((dim,))}
    return p


def init_basic_layer(pg, dim, depth, heads, mlp_ratio, attn_ratio, window_size):
    attn_depth = attn_ratio * depth
    use_attns = [i >= depth - attn_depth for i in range(depth)]     # attn_loc='last'
    blocks = []
    for i in range(depth):
        shift = 0 if i % 2 == 0 else window_size // 2
        blocks.append(init_block(pg, dim, heads, mlp_ratio, use_attns[i], shift))
    return {'dim': dim, 'heads': heads, 'ws': window_size, 'blocks': blocks}


def init_patch_embed(pg, patch_size, in_chans, embed_dim, kernel_size=None):
    if kernel_size is None:
        kernel_size = patch_size
    padding = (kernel_size - patch_size + 1) // 2
    return {'w': pg.normal((embed_dim, in_chans, kernel_size, kernel_size)),
            'b': pg.zeros((embed_dim,)), 'stride': patch_size, 'padding': padding}


def init_patch_unembed(pg, patch_size, out_chans, embed_dim, kernel_size=None):
    if kernel_size is None:
        kernel_size = 1
    return {'w': pg.normal((out_chans * patch_size ** 2, embed_dim, kernel_size, kernel_size)),
            'b': pg.zeros((out_chans * patch_size ** 2,)), 'patch': patch_size}


def init_mfib(pg, dim):
    return {'scale_h': pg.ones((1,)), 'scale_w': pg.ones((1,)), 'scale_c': pg.ones((1,)),
            'norm_u': init_rln(pg, dim), 'norm_d': init_rln(pg, dim),
            'qkv_u_w': pg.normal((dim * 2, dim, 1, 1)), 'qkv_u_b': pg.zeros((dim * 2,)),
            'qkv_d_w': pg.normal((dim * 2, dim, 1, 1)), 'qkv_d_b': pg.zeros((dim * 2,))}


def init_mplb(pg, dim, size):
    pd = dim // 3
    return {'hw': pg.ones((1, pd, size[0], size[1])),
            'conv_hw_w': pg.normal((pd, 1, 3, 3)),
            'ch': pg.ones((1, 1, pd, size[0])),
            'conv_ch_w': pg.normal((pd, 1, 3)),
            'cw': pg.ones((1, 1, pd, size[1])),
            'conv_cw_w': pg.normal((pd, 1, 3)),
            'conv4_w': pg.normal((dim, dim, 1, 1)), 'conv4_b': pg.zeros((dim,))}


def init_mpmfnet(key, in_chans=3, out_chans=4, window_size=8,
                 embed_dims=(24, 48, 96, 48, 24),
                 mlp_ratios=(2.0, 4.0, 4.0, 2.0, 2.0),
                 depths=(4, 4, 4, 9, 9, 9),
                 num_heads=(2, 4, 6, 1, 1),
                 attn_ratio=(1 / 4, 1 / 2, 3 / 4, 0, 0)):
    pg = ParamGen(key)
    P = {}
    P['patch_embed_inr'] = init_patch_embed(pg, 1, in_chans, embed_dims[0], 3)
    P['layer_inr'] = init_basic_layer(pg, embed_dims[0], depths[0], num_heads[0],
                                      mlp_ratios[0], attn_ratio[0], window_size)
    # TODO(synk): INR module definition not provided; use 1x1 conv embed -> in_chans.
    P['inr_w'] = pg.normal((in_chans, embed_dims[0], 1, 1))
    P['inr_b'] = pg.zeros((in_chans,))
    P['patch_embed'] = init_patch_embed(pg, 1, in_chans * 2, embed_dims[0], 3)
    P['layer1'] = init_basic_layer(pg, embed_dims[0], depths[0], num_heads[0],
                                   mlp_ratios[0], attn_ratio[0], window_size)
    P['patch_merge1'] = init_patch_embed(pg, 2, embed_dims[0], embed_dims[1])
    P['skip1_w'] = pg.normal((embed_dims[0], embed_dims[0], 1, 1))
    P['skip1_b'] = pg.zeros((embed_dims[0],))
    P['layer2'] = init_basic_layer(pg, embed_dims[1], depths[1], num_heads[1],
                                   mlp_ratios[1], attn_ratio[1], window_size)
    P['patch_merge2'] = init_patch_embed(pg, 2, embed_dims[1], embed_dims[2])
    P['skip2_w'] = pg.normal((embed_dims[1], embed_dims[1], 1, 1))
    P['skip2_b'] = pg.zeros((embed_dims[1],))
    P['layer3'] = init_basic_layer(pg, embed_dims[2], depths[2] - 1, num_heads[2],
                                   mlp_ratios[2], attn_ratio[2], window_size)
    P['layer3_prompts'] = init_mplb(pg, embed_dims[2], (16, 16))
    P['layer3_mixer'] = init_basic_layer(pg, embed_dims[2] * 2, 1, num_heads[2],
                                         mlp_ratios[2], attn_ratio[2], window_size)
    P['layer3_reduce_w'] = pg.normal((embed_dims[2], embed_dims[2] * 2, 1, 1))
    P['layer3_reduce_b'] = pg.zeros((embed_dims[2],))
    P['patch_split1'] = init_patch_unembed(pg, 2, embed_dims[3], embed_dims[2])
    P['fusion1'] = init_mfib(pg, embed_dims[3])
    P['layer4'] = init_basic_layer(pg, embed_dims[3], depths[3] - 1, num_heads[3],
                                   mlp_ratios[3], attn_ratio[3], window_size)
    P['layer4_prompts'] = init_mplb(pg, embed_dims[3], (32, 32))
    P['layer4_last'] = init_basic_layer(pg, embed_dims[3] * 2, 1, num_heads[3],
                                        mlp_ratios[3], attn_ratio[3], window_size)
    P['layer4_reduce_w'] = pg.normal((embed_dims[3], embed_dims[3] * 2, 1, 1))
    P['layer4_reduce_b'] = pg.zeros((embed_dims[3],))
    P['patch_split2'] = init_patch_unembed(pg, 2, embed_dims[4], embed_dims[3])
    P['fusion2'] = init_mfib(pg, embed_dims[4])
    P['layer5'] = init_basic_layer(pg, embed_dims[4], depths[4] - 1, num_heads[4],
                                   mlp_ratios[4], attn_ratio[4], window_size)
    P['layer5_prompts'] = init_mplb(pg, embed_dims[4], (64, 64))
    P['layer5_last'] = init_basic_layer(pg, embed_dims[4] * 2, 1, num_heads[4],
                                        mlp_ratios[4], attn_ratio[4], window_size)
    P['layer5_reduce_w'] = pg.normal((embed_dims[4], embed_dims[4] * 2, 1, 1))
    P['layer5_reduce_b'] = pg.zeros((embed_dims[4],))
    P['refinement'] = init_basic_layer(pg, embed_dims[4], depths[5], num_heads[4],
                                       mlp_ratios[4], attn_ratio[4], window_size)
    P['patch_unembed'] = init_patch_unembed(pg, 1, out_chans, embed_dims[4], 3)
    return P


# ----------------------------------------------------------------------------
# Full network forward
# ----------------------------------------------------------------------------

def mpmfnet_forward(x, P):
    """x: (B, 3, H, W) NCHW float32 (torch convention).  Internally NHWC/bf16."""
    B, _, H, W = x.shape
    input_n = x.transpose(0, 2, 3, 1).astype(jnp.float32)      # NHWC f32
    xn = input_n.astype(ACT)

    # inr_process
    x_inr_in = xn[:, ::4, ::4, :]                              # nearest, scale 0.25
    t = patch_embed_fwd(x_inr_in, P['patch_embed_inr'])
    t = basic_layer_fwd(t, P['layer_inr'])
    x_inr = pconv(t, P['inr_w'], P['inr_b'])                   # INR stand-in (see TODO)
    x_up = jnp.repeat(jnp.repeat(x_inr, 4, axis=1), 4, axis=2) # nearest, scale 4
    x = jnp.concatenate([xn, x_up.astype(ACT)], axis=-1)

    # forward_features
    x = patch_embed_fwd(x, P['patch_embed'])
    x = basic_layer_fwd(x, P['layer1'])
    skip1 = x
    x = patch_embed_fwd(x, P['patch_merge1'])
    x = basic_layer_fwd(x, P['layer2'])
    skip2 = x
    x = patch_embed_fwd(x, P['patch_merge2'])
    x = basic_layer_fwd(x, P['layer3'])
    x_prompts = mplb_fwd(x, P['layer3_prompts'])
    x = jnp.concatenate([x, x_prompts], axis=-1)
    x = basic_layer_fwd(x, P['layer3_mixer'])
    x = pconv(x, P['layer3_reduce_w'], P['layer3_reduce_b'])
    x = patch_unembed_fwd(x, P['patch_split1'])
    x = mfib_fwd(x, pconv(skip2, P['skip2_w'], P['skip2_b']), P['fusion1'])
    x = basic_layer_fwd(x, P['layer4'])
    x_prompts = mplb_fwd(x, P['layer4_prompts'])
    x = jnp.concatenate([x, x_prompts], axis=-1)
    x = basic_layer_fwd(x, P['layer4_last'])
    x = pconv(x, P['layer4_reduce_w'], P['layer4_reduce_b'])
    x = patch_unembed_fwd(x, P['patch_split2'])
    x = mfib_fwd(x, pconv(skip1, P['skip1_w'], P['skip1_b']), P['fusion2'])
    x = basic_layer_fwd(x, P['layer5'])
    x_prompts = mplb_fwd(x, P['layer5_prompts'])
    x = jnp.concatenate([x, x_prompts], axis=-1)
    x = basic_layer_fwd(x, P['layer5_last'])
    x = pconv(x, P['layer5_reduce_w'], P['layer5_reduce_b'])
    x = basic_layer_fwd(x, P['refinement'])
    feat = patch_unembed_fwd(x, P['patch_unembed']).astype(jnp.float32)

    K = feat[..., :1]
    Bmap = feat[..., 1:]
    out_n = K * input_n - Bmap + input_n
    out = out_n[:, :H, :W, :].transpose(0, 3, 1, 2)
    x_inr_out = x_inr.astype(jnp.float32).transpose(0, 3, 1, 2)
    return out, x_inr_out


# ----------------------------------------------------------------------------
# Main
# ----------------------------------------------------------------------------

if __name__ == "__main__":
    key = jax.random.PRNGKey(0)
    params = init_mpmfnet(key)
    x = jax.random.normal(jax.random.fold_in(key, 999), (1, 3, 32, 32), dtype=jnp.float32)

    out, x_inr = mpmfnet_forward(x, params)
    out = jax.block_until_ready(out)
    x_inr = jax.block_until_ready(x_inr)

    assert out.shape == (1, 3, 32, 32), out.shape
    assert x_inr.shape == (1, 3, 8, 8), x_inr.shape
    assert bool(jnp.all(jnp.isfinite(out))) and bool(jnp.all(jnp.isfinite(x_inr)))
    print("KERNEL_OK")
</pallas_src>

<mosaic_0001>
module attributes {stable_mosaic.version = 11 : i64} {
  func.func @_mm_kernel(%arg0: i32, %arg1: memref<64x27xbf16, #tpu.memory_space<vmem>>, %arg2: memref<27x24xbf16, #tpu.memory_space<vmem>>, %arg3: memref<1x24xf32, #tpu.memory_space<vmem>>, %arg4: memref<64x24xbf16, #tpu.memory_space<vmem>>) attributes {dimension_semantics = [#tpu.dimension_semantics<parallel>], iteration_bounds = array<i64: 1>, scalar_prefetch = 0 : i64, scratch_operands = 0 : i64, tpu.core_type = #tpu.core_type<tc>, window_params = [{transform_indices = @transform_0, window_bounds = array<i64: 64, 27>}, {pipeline_mode = #tpu.pipeline_mode<synchronous>, transform_indices = @transform_1, window_bounds = array<i64: 27, 24>}, {pipeline_mode = #tpu.pipeline_mode<synchronous>, transform_indices = @transform_2, window_bounds = array<i64: 1, 24>}, {transform_indices = @transform_3, window_bounds = array<i64: 64, 24>}]} {
    %c0 = arith.constant 0 : index
    %c0_0 = arith.constant 0 : index
    %0 = vector.load %arg1[%c0, %c0_0] : memref<64x27xbf16, #tpu.memory_space<vmem>>, vector<64x27xbf16>
    %c0_1 = arith.constant 0 : index
    %c0_2 = arith.constant 0 : index
    %1 = vector.load %arg2[%c0_1, %c0_2] : memref<27x24xbf16, #tpu.memory_space<vmem>>, vector<27x24xbf16>
    %cst = arith.constant dense<0.000000e+00> : vector<64x24xf32>
    %2 = tpu.matmul %0, %1, %cst {dimension_numbers = #tpu.dot_dimension_numbers<[1], [0], [0], [1], [0, 0, 1, 1], [], []>} : vector<64x27xbf16>, vector<27x24xbf16>, vector<64x24xf32> -> vector<64x24xf32>
    %c0_3 = arith.constant 0 : index
    %c0_4 = arith.constant 0 : index
    %3 = vector.load %arg3[%c0_3, %c0_4] : memref<1x24xf32, #tpu.memory_space<vmem>>, vector<1x24xf32>
    %4 = vector.broadcast %3 : vector<1x24xf32> to vector<64x24xf32>
    %5 = arith.addf %2, %4 : vector<64x24xf32>
    %6 = arith.truncf %5 : vector<64x24xf32> to vector<64x24xbf16>
    %c0_5 = arith.constant 0 : index
    %c0_6 = arith.constant 0 : index
    %7 = vector.load %arg4[%c0_5, %c0_6] : memref<64x24xbf16, #tpu.memory_space<vmem>>, vector<64x24xbf16>
    tpu.vector_store %arg4[%c0_5, %c0_6], %6 {strides = array<i32>} : memref<64x24xbf16, #tpu.memory_space<vmem>>, vector<64x24xbf16>,
    return
  }
  func.func @transform_0(%arg0: i32) -> (i32, i32) {
    %c0_i32 = arith.constant 0 : i32
    %c0_i32_0 = arith.constant 0 : i32
    return %arg0, %c0_i32 : i32, i32
  }
  func.func @transform_1(%arg0: i32) -> (i32, i32) {
    %c0_i32 = arith.constant 0 : i32
    %c0_i32_0 = arith.constant 0 : i32
    %c0_i32_1 = arith.constant 0 : i32
    return %c0_i32, %c0_i32_0 : i32, i32
  }
  func.func @transform_2(%arg0: i32) -> (i32, i32) {
    %c0_i32 = arith.constant 0 : i32
    %c0_i32_0 = arith.constant 0 : i32
    %c0_i32_1 = arith.constant 0 : i32
    return %c0_i32, %c0_i32_0 : i32, i32
  }
  func.func @transform_3(%arg0: i32) -> (i32, i32) {
    %c0_i32 = arith.constant 0 : i32
    %c0_i32_0 = arith.constant 0 : i32
    return %arg0, %c0_i32 : i32, i32
  }
}

</mosaic_0001>

<bundles_post_ra>
// kernel: tpu_custom_call.1
= control target key start
LH: loop header
LB: loop body
LE: loop exit
PB: predicated region body
PF: predicated region fallthrough
CT: control target
= control target key end

     0   :  { %vm78_vm0 = vcmask 1044480   ;;  %vm79_vm1 = vcmask 1045504   ;;  %v251_v1 = vmov 65535   ;;  %vm65_vm2 = vcmask 220160   ;;  %s329_s1 = inlined_call_operand.vmem [shape: bf16[27,24], index: 1, kind: input, shape index: {}]   ;;  %s330_s0 = inlined_call_operand.vmem [shape: bf16[64,27], index: 0, kind: input, shape index: {}]   ;;  %s331_s2 = inlined_call_operand.vmem [shape: f32[1,24], index: 2, kind: input, shape index: {}]   ;;  %s332_s3 = inlined_call_operand.vmem [shape: bf16[64,24], index: 3, kind: output, shape index: {}]  }
   0x1   :  { %v245_v0 = vld [vmem:[%s329_s1 + $0x8] sm:$0x3f]   ;;  %v80_v2 = vsel %vm78_vm0, 4294967295, %v251_v1  ;;  %v247_v4 = vld [vmem:[%s330_s0] sm:$0xff]   ;;  %v248_v7 = vld [vmem:[%s330_s0 + $0x10] sm:$0xff]   ;;  %vm182_vm3 = vcmask 191488  }
   0x2   :  { %v81_v3 = vsel %vm79_vm1, %v80_v2, 0  ;;  %v246_v6 = vld [vmem:[%s329_s1] sm:$0xff]   ;;  %232 = vmatprep.mubr.msk.bf16.mxu0 %vm65_vm2, %v247_v4  ;;  %236 = vmatprep.mubr.msk.bf16.mxu1 %vm65_vm2, %v248_v7  ;;  %v249_v8 = vld [vmem:[%s330_s0 + $0x8] sm:$0xff]   ;;  %v250_v9 = vld [vmem:[%s330_s0 + $0x18] sm:$0xff]  }
   0x3   :  { %v83_v5 = vand.u32 %v245_v0, %v81_v3  ;;  %v195_v10 = vld [vmem:[%s331_s2] ss:$0 sm:$0xff] }
   0x5   :  { %228 = vmatprep.subr.bf16.mxu0 %v83_v5  ;;  %240 = vmatprep.subr.bf16.mxu1 %v83_v5 }
   0x6   :  { %229 = vmatpush3.bf16.msra.mxu0 %v83_v5  ;;  %242 = vmatpush3.bf16.msra.mxu1 %v83_v5 }
   0x7   :  { %230 = vmatprep.subr.bf16.mxu0 %v246_v6  ;;  %241 = vmatprep.subr.bf16.mxu1 %v246_v6 }
   0xa   :  { %231 = vmatpush3.bf16.msra.mxu0 %v246_v6  ;;  %243 = vmatpush3.bf16.msra.mxu1 %v246_v6 }
   0xd   :  { %233 = vmatmul.mubr.msk.bf16.vlgmr.msra.gmra.mxu0 %vm65_vm2, %v249_v8  ;;  %237 = vmatmul.mubr.msk.bf16.vlgmr.msra.gmra.mxu1 %vm65_vm2, %v250_v9 }
  0xcd   :  { %v234_v11 = vpop.f32.mrf.mxu0  ;;  %v238_v12 = vpop.f32.mrf.mxu1 }
  0xce   :  { %v128_v13 = vadd.f32 %v234_v11, %v195_v10  ;;  %v144_v14 = vadd.f32 %v238_v12, %v195_v10 }
  0xcf   :  { %v119_v15 = vpop.f32.mrf.mxu0  ;;  %v135_v16 = vpop.f32.mrf.mxu1 }
  0xd0   :  { %v216_v17 = vpack.c.bf16 %v128_v13, %v128_v13  ;;  %v220_v18 = vpack.c.bf16 %v144_v14, %v144_v14  ;;  %v120_v19 = vadd.f32 %v195_v10, %v119_v15  ;;  %v136_v20 = vadd.f32 %v195_v10, %v135_v16 }
  0xd1   :  { %v235_v21 = vpop.f32.mrf.mxu0  ;;  %v239_v22 = vpop.f32.mrf.mxu1 }
  0xd2   :  { %185 = vst.msk [vmem:[%s332_s3 + $0x8] sm:$0xf] %vm182_vm3, %v216_v17  ;;  %189 = vst.msk [vmem:[%s332_s3 + $0x18] sm:$0xf] %vm182_vm3, %v220_v18  ;;  %v214_v23 = vpack.c.bf16 %v120_v19, %v120_v19  ;;  %v218_v24 = vpack.c.bf16 %v136_v20, %v136_v20  ;;  %v131_v25 = vadd.f32 %v235_v21, %v195_v10 }
  0xd3   :  { %v147_v26 = vadd.f32 %v239_v22, %v195_v10  ;;  %v122_v27 = vpop.f32.mrf.mxu0  ;;  %v138_v28 = vpop.f32.mrf.mxu1 }
  0xd4   :  { %183 = vst.msk [vmem:[%s332_s3] sm:$0xf] %vm182_vm3, %v214_v23  ;;  %187 = vst.msk [vmem:[%s332_s3 + $0x10] sm:$0xf] %vm182_vm3, %v218_v24  ;;  %v217_v29 = vpack.c.bf16 %v131_v25, %v131_v25  ;;  %v123_v31 = vadd.f32 %v195_v10, %v122_v27  ;;  %v139_v32 = vadd.f32 %v195_v10, %v138_v28 }
  0xd5   :  { %v221_v30 = vpack.c.bf16 %v147_v26, %v147_v26 }
  0xd6   :  { %186 = vst.msk [vmem:[%s332_s3 + $0xc] sm:$0xf] %vm182_vm3, %v217_v29  ;;  %v215_v33 = vpack.c.bf16 %v123_v31, %v123_v31  ;;  %v219_v34 = vpack.c.bf16 %v139_v32, %v139_v32 }
  0xd7   :  { %190 = vst.msk [vmem:[%s332_s3 + $0x1c] sm:$0xf] %vm182_vm3, %v221_v30 }
  0xd8   :  { %184 = vst.msk [vmem:[%s332_s3 + $0x4] sm:$0xf] %vm182_vm3, %v215_v33  ;;  %188 = vst.msk [vmem:[%s332_s3 + $0x14] sm:$0xf] %vm182_vm3, %v219_v34 }

</bundles_post_ra>
